<compile_context>
chip_gen: v5e
topology: v5e:2x2
jax: 0.10.0
libtpu: 0.0.40
codegen_flags: <defaults>
</compile_context>

<pallas_src>
import functools

import jax
import jax.numpy as jnp
from jax.experimental import pallas as pl
from jax.experimental.pallas import tpu as pltpu


def _fused_mlp_kernel(emb_ref, w_in_ref, w_rest_ref, b_ref, out_ref, *,
                      hidden, n_layers, n_chunks):
    """One batch tile of the post-encoder forward pass.

    emb_ref    : [TB, n_chunks, emb_dim] f32 per-chunk embeddings
    w_in_ref   : [emb_dim, hidden]                       bf16 first classifier layer
    w_rest_ref : [hidden, (n_layers-1)*hidden + head_pad] bf16: w1|...|w_{L-1}|(fc1|fc2|0)
    b_ref      : [1, n_layers*hidden + head_pad]          f32:  b0|...|b_{L-1}|(bc|bs|0)
    out_ref    : [TB, head_pad] fused head outputs (topic | sentiment | zero pad)
    """
    cdt = w_in_ref.dtype  # MXU input dtype (bf16); accumulation stays f32

    # torch.mean(torch.stack(embeddings, dim=0), dim=0) per article -> [TB, D] f32
    x = jnp.sum(emb_ref[...], axis=1) * (1.0 / n_chunks)

    # classifier layer 0: Linear + ReLU  (dropout = eval identity)
    h = jnp.dot(x.astype(cdt), w_in_ref[...],
                preferred_element_type=jnp.float32)
    h = jnp.maximum(h + b_ref[:, 0:hidden], 0.0)

    # classifier layers 1 .. n_layers-1 (static unroll; all [hidden, hidden])
    for l in range(1, n_layers):
        w = w_rest_ref[:, (l - 1) * hidden:l * hidden]
        b = b_ref[:, l * hidden:(l + 1) * hidden]
        h = jnp.dot(h.astype(cdt), w, preferred_element_type=jnp.float32)
        h = jnp.maximum(h + b, 0.0)

    # fused heads: single lane-dense matmul + single unmasked store
    head_off = (n_layers - 1) * hidden
    out = jnp.dot(h.astype(cdt), w_rest_ref[:, head_off:],
                  preferred_element_type=jnp.float32)
    out_ref[...] = out + b_ref[:, n_layers * hidden:]


def pack_params(layer_ws, layer_bs, wc, bc, ws, bs, *, weight_dtype=jnp.bfloat16):
    """Pack classifier + head params into (w_in, w_rest_slab, b_slab)."""
    emb_dim, hidden = layer_ws[0].shape
    n_cls, n_sent = wc.shape[1], ws.shape[1]
    n_heads = n_cls + n_sent
    head_pad = max(128, pl.cdiv(n_heads, 128) * 128)  # lane-dense head width

    # fused, zero-padded head weights / biases
    wh = jnp.zeros((hidden, head_pad), jnp.float32)
    wh = wh.at[:, :n_cls].set(wc).at[:, n_cls:n_heads].set(ws)
    bh = jnp.zeros((1, head_pad), jnp.float32)
    bh = bh.at[:, :n_cls].set(bc[0]).at[:, n_cls:n_heads].set(bs[0])

    w_in = layer_ws[0].astype(weight_dtype)                              # [D, H]
    w_rest = jnp.concatenate(list(layer_ws[1:]) + [wh],
                             axis=1).astype(weight_dtype)                # [H, (L-1)H + head_pad]
    b_slab = jnp.concatenate(list(layer_bs) + [bh],
                             axis=1).astype(jnp.float32)                 # [1, L*H + head_pad]
    return w_in, w_rest, b_slab


@functools.partial(
    jax.jit,
    static_argnames=("n_classes", "n_sentiment", "hidden", "n_layers", "tile_b"))
def multi_task_classifier_forward(emb, w_in, w_rest, b_slab, *, n_classes,
                                  n_sentiment, hidden, n_layers, tile_b=8):
    """emb: [B, num_chunks, emb_dim] f32 chunk embeddings (B articles)."""
    B, C, D = emb.shape
    rest_w = w_rest.shape[1]
    bias_w = b_slab.shape[1]
    head_pad = rest_w - (n_layers - 1) * hidden

    b_pad = pl.cdiv(B, tile_b) * tile_b
    if b_pad != B:
        emb = jnp.pad(emb, ((0, b_pad - B), (0, 0), (0, 0)))
    grid = (b_pad // tile_b,)

    flops = 2 * b_pad * (D * hidden
                         + (n_layers - 1) * hidden * hidden
                         + hidden * head_pad)
    bytes_accessed = (b_pad * C * D * emb.dtype.itemsize
                      + D * hidden * w_in.dtype.itemsize
                      + hidden * rest_w * w_rest.dtype.itemsize
                      + bias_w * b_slab.dtype.itemsize
                      + b_pad * head_pad * 4)

    out = pl.pallas_call(
        functools.partial(_fused_mlp_kernel,
                          hidden=hidden, n_layers=n_layers, n_chunks=C),
        out_shape=jax.ShapeDtypeStruct((b_pad, head_pad), jnp.float32),
        grid=grid,
        in_specs=[
            pl.BlockSpec((tile_b, C, D), lambda i: (i, 0, 0)),    # batch-tiled embeddings
            pl.BlockSpec((D, hidden), lambda i: (0, 0)),          # first-layer weight (resident)
            pl.BlockSpec((hidden, rest_w), lambda i: (0, 0)),     # hidden+head weight slab (resident)
            pl.BlockSpec((1, bias_w), lambda i: (0, 0)),          # bias slab (resident)
        ],
        out_specs=pl.BlockSpec((tile_b, head_pad), lambda i: (i, 0)),
        compiler_params=pltpu.CompilerParams(
            dimension_semantics=("parallel",)),                   # v7x: shard batch on 2 TCs
        cost_estimate=pl.CostEstimate(
            flops=flops, transcendentals=0, bytes_accessed=bytes_accessed),
    )(emb, w_in, w_rest, b_slab)

    logits = out[:B, :n_classes]
    sentiment = out[:B, n_classes:n_classes + n_sentiment]
    return logits, sentiment


def init_params(key, emb_dim, hidden, n_layers, n_classes, n_sentiment):
    """Deterministic synthetic parameters (shapes match the torch module)."""
    ks = jax.random.split(key, 2 * n_layers + 4)

    def linear(kw, kb, fan_in, fan_out):
        bound = 1.0 / jnp.sqrt(fan_in)
        w = jax.random.uniform(kw, (fan_in, fan_out), jnp.float32, -bound, bound)
        b = jax.random.uniform(kb, (1, fan_out), jnp.float32, -bound, bound)
        return w, b

    layer_ws, layer_bs = [], []
    fan_in = emb_dim
    for l in range(n_layers):
        w, b = linear(ks[2 * l], ks[2 * l + 1], fan_in, hidden)
        layer_ws.append(w)
        layer_bs.append(b)
        fan_in = hidden
    wc, bc = linear(ks[-4], ks[-3], hidden, n_classes)      # fc1 (topic)
    ws, bs = linear(ks[-2], ks[-1], hidden, n_sentiment)    # fc2 (sentiment)
    return layer_ws, layer_bs, wc, bc, ws, bs


def reference_forward(emb, layer_ws, layer_bs, wc, bc, ws, bs,
                      weight_dtype=jnp.bfloat16):
    """Pure-JAX reference with the same bf16-weight / f32-accumulate math."""
    cdt = weight_dtype
    h = jnp.mean(emb, axis=1)
    for w, b in zip(layer_ws, layer_bs):
        h = jnp.maximum(jnp.dot(h.astype(cdt), w.astype(cdt),
                                preferred_element_type=jnp.float32) + b, 0.0)
    logits = jnp.dot(h.astype(cdt), wc.astype(cdt),
                     preferred_element_type=jnp.float32) + bc
    sentiment = jnp.dot(h.astype(cdt), ws.astype(cdt),
                        preferred_element_type=jnp.float32) + bs
    return logits, sentiment


if __name__ == "__main__":
    # config: hidden_layer_size=128, num_hidden_layers=2,
    #         output_classes=8, output_classes_sentiment=3,
    #         activation_function='relu', dropout handled as eval identity.
    B = 3             # articles per batch (padded to tile_b=8 inside the wrapper)
    NUM_CHUNKS = 8
    EMB_DIM = 128
    HIDDEN = 128
    N_LAYERS = 2
    N_CLASSES = 8
    N_SENTIMENT = 3

    key = jax.random.PRNGKey(0)
    k_emb, k_par = jax.random.split(key)

    # Synthetic per-chunk sentence embeddings (output of self.auto_model.encode).
    emb = jax.random.normal(k_emb, (B, NUM_CHUNKS, EMB_DIM), jnp.float32)
    params = init_params(k_par, EMB_DIM, HIDDEN, N_LAYERS, N_CLASSES, N_SENTIMENT)
    w_in, w_rest, b_slab = pack_params(*params)

    logits, sentiment = multi_task_classifier_forward(
        emb, w_in, w_rest, b_slab,
        n_classes=N_CLASSES, n_sentiment=N_SENTIMENT,
        hidden=HIDDEN, n_layers=N_LAYERS)
    jax.block_until_ready((logits, sentiment))

    ref_logits, ref_sentiment = reference_forward(emb, *params)
    assert logits.shape == (B, N_CLASSES)
    assert sentiment.shape == (B, N_SENTIMENT)
    assert jnp.allclose(logits, ref_logits, atol=1e-3, rtol=1e-3)
    assert jnp.allclose(sentiment, ref_sentiment, atol=1e-3, rtol=1e-3)

    print("KERNEL_OK")
</pallas_src>

<mosaic_0001>
module attributes {stable_mosaic.version = 11 : i64} {
  func.func @_fused_mlp_kernel(%arg0: i32, %arg1: memref<8x8x128xf32, #tpu.memory_space<vmem>>, %arg2: memref<128x128xbf16, #tpu.memory_space<vmem>>, %arg3: memref<128x256xbf16, #tpu.memory_space<vmem>>, %arg4: memref<1x384xf32, #tpu.memory_space<vmem>>, %arg5: memref<8x128xf32, #tpu.memory_space<vmem>>) attributes {dimension_semantics = [#tpu.dimension_semantics<parallel>], iteration_bounds = array<i64: 1>, scalar_prefetch = 0 : i64, scratch_operands = 0 : i64, tpu.core_type = #tpu.core_type<tc>, window_params = [{transform_indices = @transform_0, window_bounds = array<i64: 8, 8, 128>}, {pipeline_mode = #tpu.pipeline_mode<synchronous>, transform_indices = @transform_1, window_bounds = array<i64: 128, 128>}, {pipeline_mode = #tpu.pipeline_mode<synchronous>, transform_indices = @transform_2, window_bounds = array<i64: 128, 256>}, {pipeline_mode = #tpu.pipeline_mode<synchronous>, transform_indices = @transform_3, window_bounds = array<i64: 1, 384>}, {transform_indices = @transform_4, window_bounds = array<i64: 8, 128>}]} {
    %c0 = arith.constant 0 : index
    %c0_0 = arith.constant 0 : index
    %c0_1 = arith.constant 0 : index
    %0 = vector.load %arg1[%c0, %c0_0, %c0_1] : memref<8x8x128xf32, #tpu.memory_space<vmem>>, vector<8x8x128xf32>
    %cst = arith.constant dense<0.000000e+00> : vector<8x128xf32>
    %1 = vector.multi_reduction <add>, %0, %cst [1] : vector<8x8x128xf32> to vector<8x128xf32>
    %cst_2 = arith.constant 1.250000e-01 : f32
    %2 = vector.broadcast %cst_2 : f32 to vector<8x128xf32>
    %3 = arith.mulf %1, %2 : vector<8x128xf32>
    %4 = arith.truncf %3 : vector<8x128xf32> to vector<8x128xbf16>
    %c0_3 = arith.constant 0 : index
    %c0_4 = arith.constant 0 : index
    %5 = vector.load %arg2[%c0_3, %c0_4] : memref<128x128xbf16, #tpu.memory_space<vmem>>, vector<128x128xbf16>
    %cst_5 = arith.constant dense<0.000000e+00> : vector<8x128xf32>
    %6 = tpu.matmul %4, %5, %cst_5 {dimension_numbers = #tpu.dot_dimension_numbers<[1], [0], [0], [1], [0, 0, 1, 1], [], []>} : vector<8x128xbf16>, vector<128x128xbf16>, vector<8x128xf32> -> vector<8x128xf32>
    %c0_6 = arith.constant 0 : index
    %c0_7 = arith.constant 0 : index
    %7 = vector.load %arg4[%c0_6, %c0_7] : memref<1x384xf32, #tpu.memory_space<vmem>>, vector<1x128xf32>
    %8 = vector.broadcast %7 : vector<1x128xf32> to vector<8x128xf32>
    %9 = arith.addf %6, %8 : vector<8x128xf32>
    %cst_8 = arith.constant 0.000000e+00 : f32
    %10 = vector.broadcast %cst_8 : f32 to vector<8x128xf32>
    %11 = arith.maximumf %9, %10 : vector<8x128xf32>
    %c0_9 = arith.constant 0 : index
    %c0_10 = arith.constant 0 : index
    %12 = vector.load %arg3[%c0_9, %c0_10] : memref<128x256xbf16, #tpu.memory_space<vmem>>, vector<128x128xbf16>
    %c0_11 = arith.constant 0 : index
    %c128 = arith.constant 128 : index
    %13 = vector.load %arg4[%c0_11, %c128] : memref<1x384xf32, #tpu.memory_space<vmem>>, vector<1x128xf32>
    %14 = arith.truncf %11 : vector<8x128xf32> to vector<8x128xbf16>
    %cst_12 = arith.constant dense<0.000000e+00> : vector<8x128xf32>
    %15 = tpu.matmul %14, %12, %cst_12 {dimension_numbers = #tpu.dot_dimension_numbers<[1], [0], [0], [1], [0, 0, 1, 1], [], []>} : vector<8x128xbf16>, vector<128x128xbf16>, vector<8x128xf32> -> vector<8x128xf32>
    %16 = vector.broadcast %13 : vector<1x128xf32> to vector<8x128xf32>
    %17 = arith.addf %15, %16 : vector<8x128xf32>
    %cst_13 = arith.constant 0.000000e+00 : f32
    %18 = vector.broadcast %cst_13 : f32 to vector<8x128xf32>
    %19 = arith.maximumf %17, %18 : vector<8x128xf32>
    %20 = arith.truncf %19 : vector<8x128xf32> to vector<8x128xbf16>
    %c0_14 = arith.constant 0 : index
    %c128_15 = arith.constant 128 : index
    %21 = vector.load %arg3[%c0_14, %c128_15] : memref<128x256xbf16, #tpu.memory_space<vmem>>, vector<128x128xbf16>
    %cst_16 = arith.constant dense<0.000000e+00> : vector<8x128xf32>
    %22 = tpu.matmul %20, %21, %cst_16 {dimension_numbers = #tpu.dot_dimension_numbers<[1], [0], [0], [1], [0, 0, 1, 1], [], []>} : vector<8x128xbf16>, vector<128x128xbf16>, vector<8x128xf32> -> vector<8x128xf32>
    %c0_17 = arith.constant 0 : index
    %c256 = arith.constant 256 : index
    %23 = vector.load %arg4[%c0_17, %c256] : memref<1x384xf32, #tpu.memory_space<vmem>>, vector<1x128xf32>
    %24 = vector.broadcast %23 : vector<1x128xf32> to vector<8x128xf32>
    %25 = arith.addf %22, %24 : vector<8x128xf32>
    %c0_18 = arith.constant 0 : index
    %c0_19 = arith.constant 0 : index
    %26 = vector.load %arg5[%c0_18, %c0_19] : memref<8x128xf32, #tpu.memory_space<vmem>>, vector<8x128xf32>
    tpu.vector_store %arg5[%c0_18, %c0_19], %25 {strides = array<i32>} : memref<8x128xf32, #tpu.memory_space<vmem>>, vector<8x128xf32>,
    return
  }
  func.func @transform_0(%arg0: i32) -> (i32, i32, i32) {
    %c0_i32 = arith.constant 0 : i32
    %c0_i32_0 = arith.constant 0 : i32
    %c0_i32_1 = arith.constant 0 : i32
    return %arg0, %c0_i32, %c0_i32_0 : i32, i32, i32
  }
  func.func @transform_1(%arg0: i32) -> (i32, i32) {
    %c0_i32 = arith.constant 0 : i32
    %c0_i32_0 = arith.constant 0 : i32
    %c0_i32_1 = arith.constant 0 : i32
    return %c0_i32, %c0_i32_0 : i32, i32
  }
  func.func @transform_2(%arg0: i32) -> (i32, i32) {
    %c0_i32 = arith.constant 0 : i32
    %c0_i32_0 = arith.constant 0 : i32
    %c0_i32_1 = arith.constant 0 : i32
    return %c0_i32, %c0_i32_0 : i32, i32
  }
  func.func @transform_3(%arg0: i32) -> (i32, i32) {
    %c0_i32 = arith.constant 0 : i32
    %c0_i32_0 = arith.constant 0 : i32
    %c0_i32_1 = arith.constant 0 : i32
    return %c0_i32, %c0_i32_0 : i32, i32
  }
  func.func @transform_4(%arg0: i32) -> (i32, i32) {
    %c0_i32 = arith.constant 0 : i32
    %c0_i32_0 = arith.constant 0 : i32
    return %arg0, %c0_i32 : i32, i32
  }
}

</mosaic_0001>

<bundles_post_ra>
// kernel: multi_task_classifier_forward.1
= control target key start
LH: loop header
LB: loop body
LE: loop exit
PB: predicated region body
PF: predicated region fallthrough
CT: control target
= control target key end

     0   :  { %9 = vsyncpa [#allocation3], 0  ;;  %s542_s18 = smov [#allocation2]   ;;  %s543_s20 = smov 128   ;;  %s635_s0 = inlined_call_operand.vmem [shape: f32[8,8,128], index: 0, kind: input, shape index: {}]   ;;  %s636_s1 = inlined_call_operand.vmem [shape: bf16[128,128], index: 1, kind: input, shape index: {}]   ;;  %s637_s2 = inlined_call_operand.hbm [shape: bf16[128,256], index: 2, kind: input, shape index: {}]   ;;  %s638_s3 = inlined_call_operand.vmem [shape: f32[1,384], index: 3, kind: input, shape index: {}]   ;;  %s639_s4 = inlined_call_operand.vmem [shape: f32[8,128], index: 4, kind: output, shape index: {}]  }
   0x1   :  { %s18_s17 = sshll.u32 %s637_s2, 4  ;;  %s20_s19 = sshll.u32 %s542_s18, 4  ;;  %s19_s17 = int_to_ptr.hbm [resolvable:$true] %s18_s17  ;;  %s21_s19 = int_to_ptr.vmem [resolvable:$true] %s20_s19 }
   0x2   :  { %s544_s21 = smov 8  }
   0x3   :  { %26 = dma.hbm_to_vmem [thread:$0]  %s19_s17, 2048, %s21_s19, [#allocation3], %s543_s20, %s543_s20, %s544_s21  }
   0x4   :  { %540 = dma.done.wait [#allocation3], 2048  }
   0x5   :  { %541 = vsyncadd [#allocation3], 4294965248  ;;  %v493_v0 = vld [vmem:[%s636_s1 + $0x38] sm:$0xff]  ;;  %v492_v1 = vld [vmem:[%s636_s1 + $0x30] sm:$0xff]  ;;  %vm141_vm0 = vcmask 1041409   ;;  %vm143_vm1 = vcmask 1042434  }
   0x6   :  { %205 = vmatpush.bf16.msra.mxu0 %v493_v0  ;;  %v33_v2 = vld [vmem:[%s635_s0] sm:$0xff]  ;;  %v34_v3 = vld [vmem:[%s635_s0 + $0x8] sm:$0xff]  ;;  %v35_v4 = vld [vmem:[%s635_s0 + $0x10] sm:$0xff]  ;;  %vm145_vm2 = vcmask 1043459   ;;  %vm147_vm3 = vcmask 1044484   ;;  %vm149_vm4 = vcmask 1045509  }
   0x7   :  { %v36_v5 = vld [vmem:[%s635_s0 + $0x18] sm:$0xff]  ;;  %v41_v6 = vrot.slane %v33_v2, 4  ;;  %v37_v7 = vld [vmem:[%s635_s0 + $0x20] sm:$0xff]  ;;  %v38_v8 = vld [vmem:[%s635_s0 + $0x28] sm:$0xff]  ;;  %v47_v10 = vrot.slane %v34_v3, 4  ;;  %v53_v11 = vrot.slane %v35_v4, 4 }
   0x8   :  { %v39_v9 = vld [vmem:[%s635_s0 + $0x30] sm:$0xff]  ;;  %v59_v12 = vrot.slane %v36_v5, 4  ;;  %v40_v13 = vld [vmem:[%s635_s0 + $0x38] sm:$0xff]  ;;  %v65_v15 = vrot.slane %v37_v7, 4  ;;  %v71_v16 = vrot.slane %v38_v8, 4  ;;  %v491_v18 = vld [vmem:[%s636_s1 + $0x28] sm:$0xff] }
   0x9   :  { %v42_v14 = vadd.f32 %v41_v6, %v33_v2  ;;  %v77_v17 = vrot.slane %v39_v9, 4  ;;  %v48_v19 = vadd.f32 %v47_v10, %v34_v3  ;;  %v54_v20 = vadd.f32 %v53_v11, %v35_v4  ;;  %v490_v35 = vld [vmem:[%s636_s1 + $0x20] sm:$0xff]  ;;  %v489_v52 = vld [vmem:[%s636_s1 + $0x18] sm:$0xff]  ;;  %v452_v10 = vld [vmem:[#allocation2 + $0x70] sm:$0xf] }
   0xa   :  { %206 = vmatpush.bf16.msra.mxu0 %v492_v1  ;;  %v60_v21 = vadd.f32 %v59_v12, %v36_v5  ;;  %v83_v22 = vrot.slane %v40_v13, 4  ;;  %v66_v24 = vadd.f32 %v65_v15, %v37_v7  ;;  %v72_v25 = vadd.f32 %v71_v16, %v38_v8  ;;  %v488_v5 = vld [vmem:[%s636_s1 + $0x10] sm:$0xff]  ;;  %v501_v11 = vld [vmem:[#allocation2 + $0x74] sm:$0xf0] }
   0xb   :  { %v43_v23 = vrot.slane %v42_v14, 2  ;;  %v78_v26 = vadd.f32 %v77_v17, %v39_v9  ;;  %v49_v27 = vrot.slane %v48_v19, 2  ;;  %v55_v28 = vrot.slane %v54_v20, 2 }
   0xc   :  { %v61_v29 = vrot.slane %v60_v21, 2  ;;  %v84_v30 = vadd.f32 %v83_v22, %v40_v13  ;;  %v67_v32 = vrot.slane %v66_v24, 2  ;;  %v73_v33 = vrot.slane %v72_v25, 2 }
   0xd   :  { %v44_v31 = vadd.f32 %v43_v23, %v42_v14  ;;  %v79_v34 = vrot.slane %v78_v26, 2  ;;  %v50_v36 = vadd.f32 %v49_v27, %v48_v19  ;;  %v56_v37 = vadd.f32 %v55_v28, %v54_v20  ;;  %v448_v20 = vld [vmem:[#allocation2 + $0x60] sm:$0xf] }
   0xe   :  { %207 = vmatpush.bf16.msra.mxu0 %v491_v18  ;;  %v62_v38 = vadd.f32 %v61_v29, %v60_v21  ;;  %v85_v39 = vrot.slane %v84_v30, 2  ;;  %v68_v41 = vadd.f32 %v67_v32, %v66_v24  ;;  %v74_v42 = vadd.f32 %v73_v33, %v72_v25  ;;  %v500_v21 = vld [vmem:[#allocation2 + $0x64] sm:$0xf0]  ;;  %v444_v32 = vld [vmem:[#allocation2 + $0x50] sm:$0xf] }
   0xf   :  { %v45_v40 = vrot.slane %v44_v31, 1  ;;  %v80_v43 = vadd.f32 %v79_v34, %v78_v26  ;;  %v51_v44 = vrot.slane %v50_v36, 1  ;;  %v57_v45 = vrot.slane %v56_v37, 1  ;;  %v487_v24 = vld [vmem:[%s636_s1 + $0x8] sm:$0xff]  ;;  %v499_v33 = vld [vmem:[#allocation2 + $0x54] sm:$0xf0] }
  0x10   :  { %v63_v46 = vrot.slane %v62_v38, 1  ;;  %v86_v47 = vadd.f32 %v85_v39, %v84_v30  ;;  %v69_v49 = vrot.slane %v68_v41, 1  ;;  %v75_v50 = vrot.slane %v74_v42, 1 }
  0x11   :  { %v46_v48 = vadd.f32 %v45_v40, %v44_v31  ;;  %v81_v51 = vrot.slane %v80_v43, 1  ;;  %v52_v53 = vadd.f32 %v51_v44, %v50_v36  ;;  %v58_v54 = vadd.f32 %v57_v45, %v56_v37  ;;  %v440_v40 = vld [vmem:[#allocation2 + $0x40] sm:$0xf]  ;;  %v436_v44 = vld [vmem:[#allocation2 + $0x30] sm:$0xf] }
  0x12   :  { %208 = vmatpush.bf16.msra.mxu0 %v490_v35  ;;  %v64_v55 = vadd.f32 %v63_v46, %v62_v38  ;;  %v87_v56 = vrot.slane %v86_v47, 1  ;;  %v70_v57 = vadd.f32 %v69_v49, %v68_v41  ;;  %v76_v58 = vadd.f32 %v75_v50, %v74_v42  ;;  %v486_v35 = vld [vmem:[%s636_s1] sm:$0xff]  ;;  %v498_v41 = vld [vmem:[#allocation2 + $0x44] sm:$0xf0]  ;;  %v497_v45 = vld [vmem:[#allocation2 + $0x34] sm:$0xf0] }
  0x13   :  { %v82_v59 = vadd.f32 %v81_v51, %v80_v43  ;;  %v89_v60 = vmul.f32 0.125, %v46_v48  ;;  %v90_v62 = vmul.f32 0.125, %v52_v53  ;;  %v91_v63 = vmul.f32 0.125, %v58_v54  ;;  %v496_v48 = vld [vmem:[#allocation2 + $0x24] sm:$0xf0] }
  0x14   :  { %v88_v61 = vadd.f32 %v87_v56, %v86_v47  ;;  %v92_v0 = vmul.f32 0.125, %v64_v55  ;;  %v93_v1 = vmul.f32 0.125, %v70_v57  ;;  %v94_v2 = vmul.f32 0.125, %v76_v58  ;;  %v432_v47 = vld [vmem:[#allocation2 + $0x20] sm:$0xf] }
  0x15   :  { %v95_v3 = vmul.f32 0.125, %v82_v59  ;;  %v97_v4 = vpack.c.bf16 %v89_v60, %v89_v60  ;;  %v98_v7 = vpack.c.bf16 %v90_v62, %v90_v62  ;;  %v99_v8 = vpack.c.bf16 %v91_v63, %v91_v63  ;;  %v428_v50 = vld [vmem:[#allocation2 + $0x10] sm:$0xf]  ;;  %v495_v51 = vld [vmem:[#allocation2 + $0x14] sm:$0xf0] }
  0x16   :  { %209 = vmatpush.bf16.msra.mxu0 %v489_v52  ;;  %v96_v6 = vmul.f32 0.125, %v88_v61  ;;  %v100_v9 = vpack.c.bf16 %v92_v0, %v92_v0  ;;  %v101_v12 = vpack.c.bf16 %v93_v1, %v93_v1  ;;  %v102_v13 = vpack.c.bf16 %v94_v2, %v94_v2  ;;  %v424_v53 = vld [vmem:[#allocation2] sm:$0xf]  ;;  %v494_v54 = vld [vmem:[#allocation2 + $0x4] sm:$0xf0] }
  0x17   :  { %v103_v14 = vpack.c.bf16 %v95_v3, %v95_v3  ;;  %v133_v15 = vunpack.c.l.b16 %v97_v4  ;;  %v134_v17 = vunpack.c.l.b16 %v98_v7  ;;  %v135_v18 = vunpack.c.l.b16 %v99_v8  ;;  %v484_v56 = vld [vmem:[#allocation2 + $0x74] sm:$0xf]  ;;  %v509_v57 = vld [vmem:[#allocation2 + $0x78] sm:$0xf0]  ;;  %v480_v58 = vld [vmem:[#allocation2 + $0x64] sm:$0xf] }
  0x18   :  { %v104_v16 = vpack.c.bf16 %v96_v6, %v96_v6  ;;  %v136_v19 = vunpack.c.l.b16 %v100_v9  ;;  %v137_v22 = vunpack.c.l.b16 %v101_v12  ;;  %v453_v23 = vor.u32 %v501_v11, %v452_v10  ;;  %v508_v60 = vld [vmem:[#allocation2 + $0x68] sm:$0xf0]  ;;  %v476_v62 = vld [vmem:[#allocation2 + $0x54] sm:$0xf]  ;;  %v507_v63 = vld [vmem:[#allocation2 + $0x58] sm:$0xf0] }
  0x19   :  { %v138_v25 = vunpack.c.l.b16 %v102_v13  ;;  %v142_v26 = vsel %vm141_vm0, %v134_v17, %v133_v15  ;;  %v139_v27 = vunpack.c.l.b16 %v103_v14  ;;  %v449_v29 = vor.u32 %v500_v21, %v448_v20  ;;  %v472_v1 = vld [vmem:[#allocation2 + $0x44] sm:$0xf]  ;;  %v506_v2 = vld [vmem:[#allocation2 + $0x48] sm:$0xf0]  ;;  %v468_v4 = vld [vmem:[#allocation2 + $0x34] sm:$0xf] }
  0x1a   :  { %210 = vmatpush.bf16.msra.mxu0 %v488_v5  ;;  %v144_v28 = vsel %vm143_vm1, %v135_v18, %v142_v26  ;;  %288 = vmatpush.bf16.msra.mxu1 %v453_v23  ;;  %v140_v30 = vunpack.c.l.b16 %v104_v16  ;;  %vm151_vm5 = vcmask 1046534   ;;  %vm153_vm6 = vcmask 1047559   ;;  %v505_v5 = vld [vmem:[#allocation2 + $0x38] sm:$0xf0]  ;;  %v464_v7 = vld [vmem:[#allocation2 + $0x24] sm:$0xf] }
  0x1b   :  { %v146_v31 = vsel %vm145_vm2, %v136_v19, %v144_v28  ;;  %v445_v38 = vor.u32 %v499_v33, %v444_v32  ;;  %v441_v43 = vor.u32 %v498_v41, %v440_v40  ;;  %v437_v46 = vor.u32 %v497_v45, %v436_v44  ;;  %v504_v8 = vld [vmem:[#allocation2 + $0x28] sm:$0xf0]  ;;  %v513_v10 = vld [vmem:[%s638_s3] ss:$0 sm:$0xff]  ;;  %v460_v16 = vld [vmem:[#allocation2 + $0x14] sm:$0xf] }
  0x1c   :  { %v148_v34 = vsel %vm147_vm3, %v137_v22, %v146_v31  ;;  %v433_v49 = vor.u32 %v496_v48, %v432_v47  ;;  %v429_v52 = vor.u32 %v495_v51, %v428_v50  ;;  %v425_v55 = vor.u32 %v494_v54, %v424_v53  ;;  %v503_v17 = vld [vmem:[#allocation2 + $0x18] sm:$0xf0]  ;;  %v456_v19 = vld [vmem:[#allocation2 + $0x4] sm:$0xf]  ;;  %v502_v20 = vld [vmem:[#allocation2 + $0x8] sm:$0xf0] }
  0x1d   :  { %v150_v36 = vsel %vm149_vm4, %v138_v25, %v148_v34  ;;  %v485_v59 = vor.u32 %v509_v57, %v484_v56  ;;  %v481_v61 = vor.u32 %v508_v60, %v480_v58  ;;  %v477_v0 = vor.u32 %v507_v63, %v476_v62  ;;  %v514_v22 = vld [vmem:[%s638_s3 + $0x1] ss:$0 sm:$0xff]  ;;  %v515_v28 = vld [vmem:[%s638_s3 + $0x2] ss:$0 sm:$0xff] }
  0x1e   :  { %211 = vmatpush.bf16.msra.mxu0 %v487_v24  ;;  %v152_v37 = vsel %vm151_vm5, %v139_v27, %v150_v36  ;;  %289 = vmatpush.bf16.msra.mxu1 %v449_v29  ;;  %v473_v3 = vor.u32 %v506_v2, %v472_v1  ;;  %v469_v6 = vor.u32 %v505_v5, %v468_v4 }
  0x1f   :  { %v154_v39 = vsel %vm153_vm6, %v140_v30, %v152_v37  ;;  %371 = vmatpush.bf16.msra.mxu2 %v485_v59  ;;  %v465_v9 = vor.u32 %v504_v8, %v464_v7  ;;  %v461_v18 = vor.u32 %v503_v17, %v460_v16  ;;  %v457_v21 = vor.u32 %v502_v20, %v456_v19 }
  0x20   :  { %v155_v42 = vpack.c.b16 %v154_v39, %v154_v39 }
  0x22   :  { %212 = vmatpush.bf16.msra.mxu0 %v486_v35  ;;  %290 = vmatpush.bf16.msra.mxu1 %v445_v38 }
  0x23   :  { %372 = vmatpush.bf16.msra.mxu2 %v481_v61 }
  0x25   :  { %213 = vmatmul.bf16.vlgmr.msra.gmra.mxu0 %v155_v42 }
  0x26   :  { %291 = vmatpush.bf16.msra.mxu1 %v441_v43 }
  0x27   :  { %373 = vmatpush.bf16.msra.mxu2 %v477_v0 }
  0x2a   :  { %292 = vmatpush.bf16.msra.mxu1 %v437_v46 }
  0x2b   :  { %374 = vmatpush.bf16.msra.mxu2 %v473_v3 }
  0x2e   :  { %293 = vmatpush.bf16.msra.mxu1 %v433_v49 }
  0x2f   :  { %375 = vmatpush.bf16.msra.mxu2 %v469_v6 }
  0x32   :  { %294 = vmatpush.bf16.msra.mxu1 %v429_v52 }
  0x33   :  { %376 = vmatpush.bf16.msra.mxu2 %v465_v9 }
  0x36   :  { %295 = vmatpush.bf16.msra.mxu1 %v425_v55 }
  0x37   :  { %377 = vmatpush.bf16.msra.mxu2 %v461_v18 }
  0x3b   :  { %378 = vmatpush.bf16.msra.mxu2 %v457_v21 }
  0xa2   :  { %v214_v11 = vpop.f32.mrf.mxu0 }
  0xa3   :  { %v215_v12 = vadd.f32 %v513_v10, %v214_v11 }
  0xa5   :  { %v218_v13 = vmax.f32 %v215_v12, 0.0 }
  0xa7   :  { %v236_v14 = vpack.c.bf16 %v218_v13, %v218_v13 }
  0xa9   :  { %296 = vmatmul.bf16.vlgmr.msra.gmra.mxu1 %v236_v14 }
  0xaa   :  { %v216_v15 = vpop.f32.mrf.mxu0 }
 0x126   :  { %v297_v23 = vpop.f32.mrf.mxu1 }
 0x127   :  { %v298_v24 = vadd.f32 %v514_v22, %v297_v23 }
 0x129   :  { %v301_v25 = vmax.f32 %v298_v24, 0.0 }
 0x12b   :  { %v302_v26 = vpack.c.bf16 %v301_v25, %v301_v25 }
 0x12d   :  { %379 = vmatmul.bf16.vlgmr.msra.gmra.mxu2 %v302_v26 }
 0x12e   :  { %v299_v27 = vpop.f32.mrf.mxu1 }
 0x1b0   :  { %v380_v29 = vpop.f32.mrf.mxu2 }
 0x1b1   :  { %v381_v30 = vadd.f32 %v515_v28, %v380_v29 }
 0x1b3   :  { %384 = vst [vmem:[%s639_s4] sm:$0xff] %v381_v30 }
 0x1b8   :  { %v382_v31 = vpop.f32.mrf.mxu2 }
 0x1b9   :  { %389 = vsyncpa [#allocation3], 1 }

</bundles_post_ra>
